<compile_context>
chip_gen: v7x
topology: tpu7x:2x2x1
jax: 0.10.0
libtpu: 0.0.40
codegen_flags: <defaults>
</compile_context>

<pallas_src>
import functools

import jax
import jax.numpy as jnp
from jax.experimental import pallas as pl
from jax.experimental.pallas import tpu as pltpu

IN_DIM = 30
HID_DIM = 50
OUT_DIM = 10


def _round_up(x, m):
    return ((x + m - 1) // m) * m


def student_kernel(x_ref, w1_ref, b_ref, w2_ref, o_ref):
    # b_ref is (2, HID_DIM): row 0 = b1 (50), row 1 = b2 (10, zero-padded).
    x = x_ref[...]                                   # (TB, 30) f32
    b1 = b_ref[0:1, :]                               # (1, 50)
    b2 = b_ref[1:2, :OUT_DIM]                        # (1, 10)

    # fc1 + ReLU  (MXU matmul, VPU elementwise)
    h = jnp.dot(x, w1_ref[...], preferred_element_type=jnp.float32) + b1
    h = jnp.maximum(h, 0.0)

    # fc2
    logits = jnp.dot(h, w2_ref[...], preferred_element_type=jnp.float32) + b2

    # softmax over feature axis (PyTorch dim=1), numerically stable
    m = jnp.max(logits, axis=-1, keepdims=True)
    e = jnp.exp(logits - m)
    denom = jnp.sum(e, axis=-1, keepdims=True)
    # EUP approximate reciprocal (free slot) + one Newton step -> ~f32 accuracy.
    r = pl.reciprocal(denom, approx=True)
    r = r * (2.0 - denom * r)
    o_ref[...] = e * r


def prepare_params(w1, b1, w2, b2):
    """One-time parameter packing/casting, hoisted out of the per-call path."""
    w1 = jnp.asarray(w1, jnp.float32)
    w2 = jnp.asarray(w2, jnp.float32)
    b1f = jnp.asarray(b1, jnp.float32).reshape(HID_DIM)
    b2f = jnp.pad(jnp.asarray(b2, jnp.float32).reshape(OUT_DIM),
                  (0, HID_DIM - OUT_DIM))
    b_packed = jnp.stack([b1f, b2f], axis=0)         # (2, HID_DIM)
    return w1, b_packed, w2


def _pick_tb(B, tb_cap):
    """Batch tile: multiple of 8 sublanes, derived from B, capped at tb_cap.

    Aims for >= 2 grid steps when the batch allows so v7x can shard the
    "parallel" batch axis across both TensorCores; the extra step on
    single-core chips costs ~0.35 us, which is noise.
    """
    B8 = _round_up(max(B, 8), 8)
    if B8 <= 8:
        return 8
    tb = _round_up(pl.cdiv(B8, 2), 8)
    return max(8, min(_round_up(tb_cap, 8), tb))


@functools.partial(jax.jit, static_argnames=("tb_cap",))
def student_forward(x, w1, b_packed, w2, *, tb_cap=4096):
    """x: (B, 30); w1: (30, 50); b_packed: (2, 50); w2: (50, 10)."""
    B = x.shape[0]
    x = x.astype(jnp.float32)

    TB = _pick_tb(B, tb_cap)
    B_pad = _round_up(B, TB)
    if B_pad != B:
        x = jnp.pad(x, ((0, B_pad - B), (0, 0)))

    grid = (B_pad // TB,)
    out = pl.pallas_call(
        student_kernel,
        out_shape=jax.ShapeDtypeStruct((B_pad, OUT_DIM), jnp.float32),
        grid_spec=pltpu.PrefetchScalarGridSpec(
            num_scalar_prefetch=0,
            grid=grid,
            in_specs=[
                pl.BlockSpec((TB, IN_DIM), lambda i: (i, 0)),        # x tile (streamed)
                pl.BlockSpec((IN_DIM, HID_DIM), lambda i: (0, 0)),   # w1 VMEM-resident
                pl.BlockSpec((2, HID_DIM), lambda i: (0, 0)),        # biases resident
                pl.BlockSpec((HID_DIM, OUT_DIM), lambda i: (0, 0)),  # w2 resident
            ],
            out_specs=pl.BlockSpec((TB, OUT_DIM), lambda i: (i, 0)),
        ),
        compiler_params=pltpu.CompilerParams(
            # Batch axis is independent -> "parallel" (2x on v7x megacore).
            dimension_semantics=("parallel",),
            # Lane-padded (TB,128) buffers for x/out/intermediates at TB=4096
            # need more than v5e's 16 MiB default scoped VMEM; 32 MiB is safe
            # on all generations (v7x physical VMEM is 64 MiB).
            vmem_limit_bytes=32 << 20,
        ),
    )(x, w1, b_packed, w2)
    return out[:B]


def init_params(key):
    # Deterministic init mimicking nn.Linear default (uniform +/- 1/sqrt(fan_in)).
    k1, k2, k3, k4 = jax.random.split(key, 4)
    bound1 = 1.0 / (IN_DIM ** 0.5)
    bound2 = 1.0 / (HID_DIM ** 0.5)
    w1 = jax.random.uniform(k1, (IN_DIM, HID_DIM), jnp.float32, -bound1, bound1)
    b1 = jax.random.uniform(k2, (HID_DIM,), jnp.float32, -bound1, bound1)
    w2 = jax.random.uniform(k3, (HID_DIM, OUT_DIM), jnp.float32, -bound2, bound2)
    b2 = jax.random.uniform(k4, (OUT_DIM,), jnp.float32, -bound2, bound2)
    return w1, b1, w2, b2


def _reference(x, w1, b1, w2, b2):
    h = jnp.maximum(x @ w1 + b1[None, :], 0.0)
    logits = h @ w2 + b2[None, :]
    return jax.nn.softmax(logits, axis=1)


if __name__ == "__main__":
    key = jax.random.PRNGKey(0)
    kx, kp = jax.random.split(key)
    B = 8
    x = jax.random.normal(kx, (B, IN_DIM), jnp.float32)
    w1, b1, w2, b2 = init_params(kp)
    w1p, b_packed, w2p = prepare_params(w1, b1, w2, b2)

    out = jax.block_until_ready(student_forward(x, w1p, b_packed, w2p))
    ref = _reference(x, w1, b1, w2, b2)
    assert out.shape == (B, OUT_DIM)
    assert jnp.allclose(out, ref, atol=1e-5, rtol=1e-5)
    assert jnp.allclose(jnp.sum(out, axis=1), 1.0, atol=1e-5)

    # Multi-tile + padded-batch path (grid > 1, B not a multiple of TB).
    B2 = 300
    x2 = jax.random.normal(jax.random.PRNGKey(1), (B2, IN_DIM), jnp.float32)
    out2 = jax.block_until_ready(
        student_forward(x2, w1p, b_packed, w2p, tb_cap=64))
    ref2 = _reference(x2, w1, b1, w2, b2)
    assert out2.shape == (B2, OUT_DIM)
    assert jnp.allclose(out2, ref2, atol=1e-5, rtol=1e-5)

    # Default (large-TB) path on a bigger batch as well.
    B3 = 1000
    x3 = jax.random.normal(jax.random.PRNGKey(2), (B3, IN_DIM), jnp.float32)
    out3 = jax.block_until_ready(student_forward(x3, w1p, b_packed, w2p))
    ref3 = _reference(x3, w1, b1, w2, b2)
    assert out3.shape == (B3, OUT_DIM)
    assert jnp.allclose(out3, ref3, atol=1e-5, rtol=1e-5)

    print("KERNEL_OK")
</pallas_src>

<mosaic_0001>
module attributes {stable_mosaic.version = 11 : i64} {
  func.func @student_kernel(%arg0: i32, %arg1: memref<8x30xf32, #tpu.memory_space<vmem>>, %arg2: memref<30x50xf32, #tpu.memory_space<vmem>>, %arg3: memref<2x50xf32, #tpu.memory_space<vmem>>, %arg4: memref<50x10xf32, #tpu.memory_space<vmem>>, %arg5: memref<8x10xf32, #tpu.memory_space<vmem>>) attributes {dimension_semantics = [#tpu.dimension_semantics<parallel>], iteration_bounds = array<i64: 1>, scalar_prefetch = 0 : i64, scratch_operands = 0 : i64, tpu.core_type = #tpu.core_type<tc>, window_params = [{transform_indices = @transform_0, window_bounds = array<i64: 8, 30>}, {pipeline_mode = #tpu.pipeline_mode<synchronous>, transform_indices = @transform_1, window_bounds = array<i64: 30, 50>}, {pipeline_mode = #tpu.pipeline_mode<synchronous>, transform_indices = @transform_2, window_bounds = array<i64: 2, 50>}, {pipeline_mode = #tpu.pipeline_mode<synchronous>, transform_indices = @transform_3, window_bounds = array<i64: 50, 10>}, {transform_indices = @transform_4, window_bounds = array<i64: 8, 10>}]} {
    %c0 = arith.constant 0 : index
    %c0_0 = arith.constant 0 : index
    %0 = vector.load %arg1[%c0, %c0_0] : memref<8x30xf32, #tpu.memory_space<vmem>>, vector<8x30xf32>
    %c0_1 = arith.constant 0 : index
    %c0_2 = arith.constant 0 : index
    %1 = vector.load %arg3[%c0_1, %c0_2] : memref<2x50xf32, #tpu.memory_space<vmem>>, vector<1x50xf32>
    %c1 = arith.constant 1 : index
    %c0_3 = arith.constant 0 : index
    %2 = vector.load %arg3[%c1, %c0_3] : memref<2x50xf32, #tpu.memory_space<vmem>>, vector<1x10xf32>
    %c0_4 = arith.constant 0 : index
    %c0_5 = arith.constant 0 : index
    %3 = vector.load %arg2[%c0_4, %c0_5] : memref<30x50xf32, #tpu.memory_space<vmem>>, vector<30x50xf32>
    %cst = arith.constant dense<0.000000e+00> : vector<8x50xf32>
    %4 = tpu.matmul %0, %3, %cst {dimension_numbers = #tpu.dot_dimension_numbers<[1], [0], [0], [1], [0, 0, 1, 1], [], []>} : vector<8x30xf32>, vector<30x50xf32>, vector<8x50xf32> -> vector<8x50xf32>
    %5 = vector.broadcast %1 : vector<1x50xf32> to vector<8x50xf32>
    %6 = arith.addf %4, %5 : vector<8x50xf32>
    %cst_6 = arith.constant 0.000000e+00 : f32
    %7 = vector.broadcast %cst_6 : f32 to vector<8x50xf32>
    %8 = arith.maximumf %6, %7 : vector<8x50xf32>
    %c0_7 = arith.constant 0 : index
    %c0_8 = arith.constant 0 : index
    %9 = vector.load %arg4[%c0_7, %c0_8] : memref<50x10xf32, #tpu.memory_space<vmem>>, vector<50x10xf32>
    %cst_9 = arith.constant dense<0.000000e+00> : vector<8x10xf32>
    %10 = tpu.matmul %8, %9, %cst_9 {dimension_numbers = #tpu.dot_dimension_numbers<[1], [0], [0], [1], [0, 0, 1, 1], [], []>} : vector<8x50xf32>, vector<50x10xf32>, vector<8x10xf32> -> vector<8x10xf32>
    %11 = vector.broadcast %2 : vector<1x10xf32> to vector<8x10xf32>
    %12 = arith.addf %10, %11 : vector<8x10xf32>
    %cst_10 = arith.constant dense<0xFF800000> : vector<8xf32>
    %13 = vector.multi_reduction <maximumf>, %12, %cst_10 [1] : vector<8x10xf32> to vector<8xf32>
    %14 = vector.shape_cast %13 : vector<8xf32> to vector<8x1xf32>
    %15 = vector.broadcast %14 : vector<8x1xf32> to vector<8x10xf32>
    %16 = arith.subf %12, %15 : vector<8x10xf32>
    %17 = math.exp %16 : vector<8x10xf32>
    %cst_11 = arith.constant dense<0.000000e+00> : vector<8xf32>
    %18 = vector.multi_reduction <add>, %17, %cst_11 [1] : vector<8x10xf32> to vector<8xf32>
    %19 = vector.shape_cast %18 : vector<8xf32> to vector<8x1xf32>
    %20 = tpu.reciprocal %19 {approx = true} : vector<8x1xf32> -> vector<8x1xf32>
    %21 = arith.mulf %19, %20 : vector<8x1xf32>
    %cst_12 = arith.constant 2.000000e+00 : f32
    %22 = vector.broadcast %cst_12 : f32 to vector<8x1xf32>
    %23 = arith.subf %22, %21 : vector<8x1xf32>
    %24 = arith.mulf %20, %23 : vector<8x1xf32>
    %25 = vector.broadcast %24 : vector<8x1xf32> to vector<8x10xf32>
    %26 = arith.mulf %17, %25 : vector<8x10xf32>
    %c0_13 = arith.constant 0 : index
    %c0_14 = arith.constant 0 : index
    %27 = vector.load %arg5[%c0_13, %c0_14] : memref<8x10xf32, #tpu.memory_space<vmem>>, vector<8x10xf32>
    tpu.vector_store %arg5[%c0_13, %c0_14], %26 {strides = array<i32>} : memref<8x10xf32, #tpu.memory_space<vmem>>, vector<8x10xf32>,
    return
  }
  func.func @transform_0(%arg0: i32) -> (i32, i32) {
    %c0_i32 = arith.constant 0 : i32
    %c0_i32_0 = arith.constant 0 : i32
    return %arg0, %c0_i32 : i32, i32
  }
  func.func @transform_1(%arg0: i32) -> (i32, i32) {
    %c0_i32 = arith.constant 0 : i32
    %c0_i32_0 = arith.constant 0 : i32
    %c0_i32_1 = arith.constant 0 : i32
    return %c0_i32, %c0_i32_0 : i32, i32
  }
  func.func @transform_2(%arg0: i32) -> (i32, i32) {
    %c0_i32 = arith.constant 0 : i32
    %c0_i32_0 = arith.constant 0 : i32
    %c0_i32_1 = arith.constant 0 : i32
    return %c0_i32, %c0_i32_0 : i32, i32
  }
  func.func @transform_3(%arg0: i32) -> (i32, i32) {
    %c0_i32 = arith.constant 0 : i32
    %c0_i32_0 = arith.constant 0 : i32
    %c0_i32_1 = arith.constant 0 : i32
    return %c0_i32, %c0_i32_0 : i32, i32
  }
  func.func @transform_4(%arg0: i32) -> (i32, i32) {
    %c0_i32 = arith.constant 0 : i32
    %c0_i32_0 = arith.constant 0 : i32
    return %arg0, %c0_i32 : i32, i32
  }
}

</mosaic_0001>

<bundles_post_ra>
// kernel: student_forward.1
= control target key start
LH: loop header
LB: loop body
LE: loop exit
PB: predicated region body
PF: predicated region fallthrough
CT: control target
= control target key end

     0   :  { %vm33_vm0 = vcmask 1045504   ;;  %v323_v3 = vmov 0.0|0.0   ;;  %vm324_vm1 = vmmov 0   ;;  %v325_v6 = vmov 0.0   ;;  %s411_s0 = inlined_call_operand.vmem [shape: f32[8,30], index: 0, kind: input, shape index: {}]   ;;  %s412_s1 = inlined_call_operand.vmem [shape: f32[30,50], index: 1, kind: input, shape index: {}]   ;;  %s413_s2 = inlined_call_operand.vmem [shape: f32[2,50], index: 2, kind: input, shape index: {}]   ;;  %s414_s3 = inlined_call_operand.vmem [shape: f32[50,10], index: 3, kind: input, shape index: {}]   ;;  %s415_s4 = inlined_call_operand.hbm [shape: f32[8,10], index: 4, kind: output, shape index: {}]  }
   0x1   :  { %v21_v0 = vld [vmem:[%s412_s1] sm:$0xff]  ;;  %v22_v1 = vld [vmem:[%s412_s1 + $0x8] sm:$0xff]  ;;  %v23_v2 = vld [vmem:[%s412_s1 + $0x10] sm:$0xff]  ;;  %274 = vmatprep.subr.bf16.mxu0 %v323_v3  ;;  %281 = vmatprep.subr.bf16.mxu1 %v323_v3 }
   0x2   :  { %v275_v4 = vpack.c.bf16 %v22_v1, %v21_v0  ;;  %v24_v5 = vld [vmem:[%s412_s1 + $0x18] sm:$0x3f]  ;;  %254 = vmatprep.mubr.msk.f32.mxu0 %vm324_vm1, %v325_v6  ;;  %v108_v7 = vld [vmem:[%s414_s3] sm:$0xff]  ;;  %v109_v8 = vld [vmem:[%s414_s3 + $0x8] sm:$0xff]  ;;  %271 = vmatprep.mubr.msk.f32.mxu1 %vm324_vm1, %v325_v6 }
   0x3   :  { %v110_v9 = vld [vmem:[%s414_s3 + $0x10] sm:$0xff]  ;;  %v278_v10 = vpack.c.bf16 %v24_v5, %v23_v2  ;;  %v282_v11 = vpack.c.bf16 %v109_v8, %v108_v7  ;;  %v111_v12 = vld [vmem:[%s414_s3 + $0x18] sm:$0xff] }
   0x4   :  { %276 = vmatpush3.bf16.msra.mxu0 %v275_v4 }
   0x5   :  { %9 = vsyncpa [#allocation3], 0  ;;  %277 = vmatprep.subr.bf16.mxu0 %v323_v3  ;;  %vm326_vm2 = vmmov 1   ;;  %283 = vmatpush3.bf16.msra.mxu1 %v282_v11  ;;  %v285_v13 = vpack.c.bf16 %v111_v12, %v110_v9  ;;  %v18_v14 = vld [vmem:[%s411_s0] sm:$0xff]  ;;  %vm29_vm4 = vcmask 244736   ;;  %v113_v16 = vld [vmem:[%s414_s3 + $0x28] sm:$0xff] }
   0x6   :  { %vm279_vm3 = vmpackc.low %vm33_vm0, %vm326_vm2  ;;  %284 = vmatprep.subr.bf16.mxu1 %v323_v3  ;;  %v112_v15 = vld [vmem:[%s414_s3 + $0x20] sm:$0xff]  ;;  %v114_v18 = vld [vmem:[%s414_s3 + $0x30] sm:$0x3]  ;;  %vm123_vm5 = vcmask 1041408   ;;  %vm119_vm6 = vcmask 408576   ;;  %vm197_vm7 = vcmask 80896  }
   0x7   :  { %v288_v17 = vpack.c.bf16 %v113_v16, %v112_v15  ;;  %v227_v19 = vld [vmem:[%s413_s2] ss:$0 sm:$0xff]  ;;  %v230_v24 = vld [vmem:[%s413_s2 + $0x1] ss:$0 sm:$0xff]  ;;  %s327_s2 = smov [#allocation2]  }
   0x8   :  { %280 = vmatpush3.bf16.msk.msra.mxu0 %vm279_vm3, %v278_v10  ;;  %s219_s3 = sshll.u32 %s327_s2, 4  ;;  %s220_s3 = int_to_ptr.vmem [resolvable:$true] %s219_s3 }
   0x9   :  { %286 = vmatpush3.bf16.msra.mxu1 %v285_v13  ;;  %s299_s15 = scalar_lea.vmem %s220_s3, 128  ;;  %p304_p1 = scmp.lt.s32.totalorder %s220_s3, %s220_s3 }
   0xa   :  { %287 = vmatprep.subr.bf16.mxu1 %v323_v3  ;;  %p300_p0 = scmp.ne.s32.totalorder %s220_s3, %s299_s15  ;;  %p305_p2 = scmp.lt.s32.totalorder %s299_s15, %s299_s15 }
   0xb   :  { %255 = vmatmul.mubr.msk.f32.vlgmr.msra.gmra.mrb[0].mxu0 %vm29_vm4, %v18_v14 }
   0xc   :  { %p306_p3 = por %p305_p2, %p304_p1 }
   0xd   :  { %289 = vmatpush3.bf16.msra.mxu1 %v288_v17 }
   0xe   :  { %269 = vmatprep.subr.mxu1 %v325_v6  ;;  %p307_p4 = pnand %p306_p3, %p300_p0 }
  0x11   :  { %270 = vmatpush3.msk.msra.mxu1 %vm123_vm5, %v114_v18 }
  0xde   :  { %v103_v20 = vpop.f32.mrb[0].mxu0 }
  0xdf   :  { %v104_v21 = vadd.f32 %v227_v19, %v103_v20  ;;  %v256_v22 = vpop.f32.mrb[1].mxu0 }
  0xe1   :  { %v107_v23 = vmax.f32 %v104_v21, 0.0 }
  0xe3   :  { %272 = vmatmul.mubr.msk.f32.vlgmr.msra.gmra.mrb[0].mxu1 %vm119_vm6, %v107_v23 }
 0x1b6   :  { %v193_v25 = vpop.f32.mrb[0].mxu1 }
 0x1b7   :  { %v194_v26 = vadd.f32 %v230_v24, %v193_v25  ;;  %v273_v27 = vpop.f32.mrb[1].mxu1 }
 0x1b9   :  { %v198_v28 = vsel %vm197_vm7, %v194_v26, -inf }
 0x1ba   :  { %199 = vmax.xlane.f32.xlu0 %v198_v28 }
 0x247   :  { %v200_v29 = vpop.xlane.xlu0 %199 }
 0x248   :  { %v201_v30 = vsub.f32 %v194_v26, %v200_v29 }
 0x24a   :  { %v202_v31 = vmul.f32 1.442695, %v201_v30 }
 0x24c   :  { %295 = vpow2.f32 %v202_v31 }
 0x256   :  { %v296_v32 = vpop.eup %295 }
 0x257   :  { %v204_v33 = vsel %vm197_vm7, %v296_v32, 0.0 }
 0x258   :  { %205 = vadd.xlane.f32.xlu0 %v204_v33 }
 0x2e5   :  { %v206_v34 = vpop.xlane.xlu0 %205 }
 0x2e6   :  { %297 = vrcp.f32 %v206_v34 }
 0x2f0   :  { %v298_v35 = vpop.eup %297 }
 0x2f1   :  { %v208_v36 = vmul.f32 %v298_v35, %v206_v34 }
 0x2f3   :  { %v209_v37 = vsub.f32 2.0, %v208_v36 }
 0x2f5   :  { %v210_v38 = vmul.f32 %v298_v35, %v209_v37 }
 0x2f7   :  { %v211_v39 = vmul.f32 %v296_v32, %v210_v38 }
 0x2f9   :  { %212 = vst.msk [vmem:[#allocation2] sm:$0xff] %vm197_vm7, %v211_v39 }
 0x2fa   :  { %310 = shalt.err (!%p307_p4)
}
 0x2fb   :  { %s311_s18 = scalar_lea.hbm %s415_s4, 128 }
 0x2fc   :  { %p312_p5 = scmp.ne.s32.totalorder %s415_s4, %s311_s18  ;;  %p315_p6 = scmp.lt.u32.totalorder %s311_s18, %s415_s4 }
 0x2fe   :  { %p317_p7 = pnand %p315_p6, %p312_p5 }
 0x300   :  { %320 = shalt.err (!%p317_p7)
}
 0x301   :  { %222 = dma.vmem_to_hbm [thread:$0]  %s220_s3, 128, %s415_s4, [#allocation3]  }
 0x302   :  { %321 = dma.done.wait [#allocation3], 128  }
 0x303   :  { %322 = vsyncadd [#allocation3], 4294967168 }
 0x304   :  { %226 = vsyncpa [#allocation3], 1 }

</bundles_post_ra>
